<compile_context>
chip_gen: v6e
topology: v6e:2x2x1
jax: 0.10.0
libtpu: 0.0.40
codegen_flags: <defaults>
</compile_context>

<pallas_src>
import jax
import jax.numpy as jnp
from jax.experimental import pallas as pl
from jax.experimental.pallas import tpu as pltpu

# ---------------- problem sizes (small, consistent with FCNet args) ----------
B        = 8                 # batch
D_IN     = 32                # args['in_dim']
HID      = 64                # args['fc_hid_dim']
D_OUT    = 32                # adaptive-extractor feature dim (FCNet out_dim == in_dim)
N_EXT    = 2                 # len(self.AdaptiveExtractors)
FEAT     = N_EXT * D_OUT     # 64   concatenated feature dim
NB_CLS   = 10                # total classes -> fc output
TASK_SZ  = 5                 # last task size
AUX_CLS  = TASK_SZ + 1       # aux_fc output = new_task_size + 1
HEAD     = NB_CLS + AUX_CLS  # 16   real head columns
HEAD_PAD = 128               # head columns padded to one full lane group
EXT_W    = HID + FEAT        # 128  [h | feats] block width (lane-aligned)
OUT_W    = HEAD_PAD + EXT_W  # 256  packed output slab: [head | h | feats]
TB_CAP   = 512               # batch-tile cap (per-step overhead amortization)

assert EXT_W == 128, "identity-augmented extractor block must be one lane group"


def adaptive_net_kernel(x_ref, w0_ref, w1_ref, wext_ref, wfin_ref, b_ref, out_ref):
    """Fused trunk + extractors + (fc ⊕ aux_fc) forward for one batch tile.

    Epilogue is a single unmasked full-tile store of the [head | h | feats] slab.
    """
    f32 = jnp.float32
    x = x_ref[...]

    # packed biases: row0=b0, row1=b1, row2=[0|ba], row3=[bfc|baux|0...]
    b0   = b_ref[0:1, :HID]
    b1   = b_ref[1:2, :HID]
    bext = b_ref[2:3, :EXT_W]
    bfin = b_ref[3:4, :]

    # --- TaskAgnosticExtractor (shared MLP trunk) -> base_feature_map --------
    h = jnp.maximum(jnp.dot(x, w0_ref[...], preferred_element_type=f32) + b0, 0.0)
    h = jnp.maximum(jnp.dot(h, w1_ref[...], preferred_element_type=f32) + b1, 0.0)

    # --- all AdaptiveExtractors + identity passthrough in ONE matmul ----------
    # wext = [I_HID | wa_packed]; h >= 0 so ReLU(h@I + 0) = h  ->  extr = [h | feats]
    extr = jnp.maximum(jnp.dot(h, wext_ref[...], preferred_element_type=f32) + bext,
                       0.0)

    # --- single matmul emits the whole slab: [fc|aux|pad (128) | h (64) | feats (64)]
    out_ref[...] = jnp.dot(extr, wfin_ref[...], preferred_element_type=f32) + bfin


def pack_params(params):
    """Wrapper-side layout plumbing: identity-augmented extractor weight, fused
    fc+aux head folded into a slab-emitting final weight, packed biases."""
    (w0, b0, w1, b1, wa, ba, wfc, bfc, waux, baux) = params
    f32 = jnp.float32

    # [E, HID, D_OUT] -> [HID, E*D_OUT], then prepend an identity block:
    # w_ext = [I_HID | wa_packed]   (HID, 128)
    wa_packed = jnp.transpose(wa, (1, 0, 2)).reshape(HID, FEAT)
    w_ext = jnp.concatenate([jnp.eye(HID, dtype=f32), wa_packed], axis=1)

    # final weight (EXT_W, OUT_W):
    #   cols [0:HEAD_PAD]  : fused head — wfc on the feats rows, waux lifted onto
    #                        the last D_OUT feats rows, zeros elsewhere (pad lanes)
    #   cols [HEAD_PAD: ]  : identity, passes [h | feats] straight through
    w_fin = jnp.zeros((EXT_W, OUT_W), f32)
    w_fin = w_fin.at[HID:HID + FEAT, :NB_CLS].set(wfc)
    w_fin = w_fin.at[EXT_W - D_OUT:, NB_CLS:HEAD].set(waux)
    w_fin = w_fin.at[:, HEAD_PAD:].set(jnp.eye(EXT_W, dtype=f32))

    # all biases in one [4, OUT_W] operand (zero padded).
    bias = jnp.zeros((4, OUT_W), f32)
    bias = bias.at[0, :HID].set(b0[0])
    bias = bias.at[1, :HID].set(b1[0])
    bias = bias.at[2, HID:HID + FEAT].set(ba.reshape(-1))   # extr bias: [0 | ba]
    bias = bias.at[3, :NB_CLS].set(bfc[0])
    bias = bias.at[3, NB_CLS:HEAD].set(baux[0])

    # TODO(synk): for v6e/v7x memory-bound large-B deployment, cast x/w0/w1/w_ext/
    # w_fin to bf16 here (keep f32 accumulation + f32 biases) — skipped to preserve
    # exact f32 parity with the reference in this script.
    return w0, w1, w_ext, w_fin, bias


def _round_up(v, m):
    return ((v + m - 1) // m) * m


def _pick_batch_tile(b):
    """Largest reasonable batch tile; for huge b, even step count for v7x's 2 TCs."""
    rb = _round_up(b, 8)
    if rb <= TB_CAP:
        return rb                      # single grid step — never split tiny batches
    steps = pl.cdiv(rb, TB_CAP)
    if steps % 2:                      # balanced split across the two TensorCores
        steps += 1
    return _round_up(pl.cdiv(rb, steps), 8)


@jax.jit
def adaptive_net_forward_slab(x, packed):
    """Returns the packed [B, 256] output slab: [head(128) | base(64) | feats(64)]."""
    w0, w1, w_ext, w_fin, bias = packed
    b = x.shape[0]
    tb = _pick_batch_tile(b)

    flops = 2 * b * (D_IN * HID + HID * HID + HID * EXT_W + EXT_W * OUT_W)
    bytes_accessed = 4 * (x.size + w0.size + w1.size + w_ext.size
                          + w_fin.size + bias.size + b * OUT_W)
    cost = pl.CostEstimate(flops=flops, transcendentals=0,
                           bytes_accessed=bytes_accessed)

    return pl.pallas_call(
        adaptive_net_kernel,
        out_shape=jax.ShapeDtypeStruct((b, OUT_W), jnp.float32),
        grid_spec=pltpu.PrefetchScalarGridSpec(
            num_scalar_prefetch=0,
            grid=(pl.cdiv(b, tb),),
            in_specs=[
                pl.BlockSpec((tb, D_IN), lambda i: (i, 0)),         # x (batch-tiled)
                pl.BlockSpec((D_IN, HID), lambda i: (0, 0)),        # w0 (resident)
                pl.BlockSpec((HID, HID), lambda i: (0, 0)),         # w1
                pl.BlockSpec((HID, EXT_W), lambda i: (0, 0)),       # [I | wa_packed]
                pl.BlockSpec((EXT_W, OUT_W), lambda i: (0, 0)),     # slab-emitting head
                pl.BlockSpec((4, OUT_W), lambda i: (0, 0)),         # packed biases
            ],
            out_specs=pl.BlockSpec((tb, OUT_W), lambda i: (i, 0)),  # lane-dense slab
        ),
        compiler_params=pltpu.CompilerParams(
            dimension_semantics=("parallel",)),   # shards grid steps across TCs (v7x)
        cost_estimate=cost,
    )(x, w0, w1, w_ext, w_fin, bias)


def adaptive_net_forward(x, packed):
    """Thin non-jit wrapper: split the slab into the module's output dict.
    Callers that only need one output (e.g. logits) can slice the slab directly."""
    slab = adaptive_net_forward_slab(x, packed)
    return {
        'logits':        slab[:, :NB_CLS],
        'aux_logits':    slab[:, NB_CLS:HEAD],
        'base_features': slab[:, HEAD_PAD:HEAD_PAD + HID],
        'features':      slab[:, HEAD_PAD + HID:HEAD_PAD + HID + FEAT],
    }
    # TODO(synk): for a writeback-bound very-large-B path, emit a 144-lane slab
    # ([base|feats|head]) instead of 256 to cut HBM writeback ~1.7x.


def reference_forward(x, params):
    (w0, b0, w1, b1, wa, ba, wfc, bfc, waux, baux) = params
    h = jnp.maximum(x @ w0 + b0, 0.0)
    h = jnp.maximum(h @ w1 + b1, 0.0)
    feats = [jnp.maximum(h @ wa[e] + ba[e:e + 1], 0.0) for e in range(N_EXT)]
    features = jnp.concatenate(feats, axis=1)
    logits = features @ wfc + bfc
    aux = features[:, -D_OUT:] @ waux + baux
    return logits, aux, features, h


def make_params(key):
    ks = jax.random.split(key, 10)
    s = 0.1
    w0 = jax.random.normal(ks[0], (D_IN, HID), jnp.float32) * s
    b0 = jax.random.normal(ks[1], (1, HID), jnp.float32) * s
    w1 = jax.random.normal(ks[2], (HID, HID), jnp.float32) * s
    b1 = jax.random.normal(ks[3], (1, HID), jnp.float32) * s
    wa = jax.random.normal(ks[4], (N_EXT, HID, D_OUT), jnp.float32) * s
    ba = jax.random.normal(ks[5], (N_EXT, D_OUT), jnp.float32) * s
    wfc = jax.random.normal(ks[6], (FEAT, NB_CLS), jnp.float32) * s
    bfc = jax.random.normal(ks[7], (1, NB_CLS), jnp.float32) * s
    waux = jax.random.normal(ks[8], (D_OUT, AUX_CLS), jnp.float32) * s
    baux = jax.random.normal(ks[9], (1, AUX_CLS), jnp.float32) * s
    return (w0, b0, w1, b1, wa, ba, wfc, bfc, waux, baux)


if __name__ == "__main__":
    key = jax.random.PRNGKey(0)
    kx, kp = jax.random.split(key)
    x = jax.random.normal(kx, (B, D_IN), jnp.float32)
    params = make_params(kp)
    packed = pack_params(params)

    out = adaptive_net_forward(x, packed)
    jax.block_until_ready(out)

    # sanity check against pure-JAX reference
    ref_logits, ref_aux, ref_feats, ref_base = reference_forward(x, params)
    assert bool(jnp.allclose(out['logits'], ref_logits, atol=1e-4))
    assert bool(jnp.allclose(out['aux_logits'], ref_aux, atol=1e-4))
    assert bool(jnp.allclose(out['features'], ref_feats, atol=1e-4))
    assert bool(jnp.allclose(out['base_features'], ref_base, atol=1e-4))

    print("KERNEL_OK")
</pallas_src>

<mosaic_0001>
module attributes {stable_mosaic.version = 11 : i64} {
  func.func @adaptive_net_kernel(%arg0: i32, %arg1: memref<8x32xf32, #tpu.memory_space<vmem>>, %arg2: memref<32x64xf32, #tpu.memory_space<vmem>>, %arg3: memref<64x64xf32, #tpu.memory_space<vmem>>, %arg4: memref<64x128xf32, #tpu.memory_space<vmem>>, %arg5: memref<128x256xf32, #tpu.memory_space<vmem>>, %arg6: memref<4x256xf32, #tpu.memory_space<vmem>>, %arg7: memref<8x256xf32, #tpu.memory_space<vmem>>) attributes {dimension_semantics = [#tpu.dimension_semantics<parallel>], iteration_bounds = array<i64: 1>, scalar_prefetch = 0 : i64, scratch_operands = 0 : i64, tpu.core_type = #tpu.core_type<tc>, window_params = [{transform_indices = @transform_0, window_bounds = array<i64: 8, 32>}, {pipeline_mode = #tpu.pipeline_mode<synchronous>, transform_indices = @transform_1, window_bounds = array<i64: 32, 64>}, {pipeline_mode = #tpu.pipeline_mode<synchronous>, transform_indices = @transform_2, window_bounds = array<i64: 64, 64>}, {pipeline_mode = #tpu.pipeline_mode<synchronous>, transform_indices = @transform_3, window_bounds = array<i64: 64, 128>}, {pipeline_mode = #tpu.pipeline_mode<synchronous>, transform_indices = @transform_4, window_bounds = array<i64: 128, 256>}, {pipeline_mode = #tpu.pipeline_mode<synchronous>, transform_indices = @transform_5, window_bounds = array<i64: 4, 256>}, {transform_indices = @transform_6, window_bounds = array<i64: 8, 256>}]} {
    %c0 = arith.constant 0 : index
    %c0_0 = arith.constant 0 : index
    %0 = vector.load %arg1[%c0, %c0_0] : memref<8x32xf32, #tpu.memory_space<vmem>>, vector<8x32xf32>
    %c0_1 = arith.constant 0 : index
    %c0_2 = arith.constant 0 : index
    %1 = vector.load %arg6[%c0_1, %c0_2] : memref<4x256xf32, #tpu.memory_space<vmem>>, vector<1x64xf32>
    %c1 = arith.constant 1 : index
    %c0_3 = arith.constant 0 : index
    %2 = vector.load %arg6[%c1, %c0_3] : memref<4x256xf32, #tpu.memory_space<vmem>>, vector<1x64xf32>
    %c2 = arith.constant 2 : index
    %c0_4 = arith.constant 0 : index
    %3 = vector.load %arg6[%c2, %c0_4] : memref<4x256xf32, #tpu.memory_space<vmem>>, vector<1x128xf32>
    %c3 = arith.constant 3 : index
    %c0_5 = arith.constant 0 : index
    %4 = vector.load %arg6[%c3, %c0_5] : memref<4x256xf32, #tpu.memory_space<vmem>>, vector<1x256xf32>
    %c0_6 = arith.constant 0 : index
    %c0_7 = arith.constant 0 : index
    %5 = vector.load %arg2[%c0_6, %c0_7] : memref<32x64xf32, #tpu.memory_space<vmem>>, vector<32x64xf32>
    %cst = arith.constant dense<0.000000e+00> : vector<8x64xf32>
    %6 = tpu.matmul %0, %5, %cst {dimension_numbers = #tpu.dot_dimension_numbers<[1], [0], [0], [1], [0, 0, 1, 1], [], []>} : vector<8x32xf32>, vector<32x64xf32>, vector<8x64xf32> -> vector<8x64xf32>
    %7 = vector.broadcast %1 : vector<1x64xf32> to vector<8x64xf32>
    %8 = arith.addf %6, %7 : vector<8x64xf32>
    %cst_8 = arith.constant 0.000000e+00 : f32
    %9 = vector.broadcast %cst_8 : f32 to vector<8x64xf32>
    %10 = arith.maximumf %8, %9 : vector<8x64xf32>
    %c0_9 = arith.constant 0 : index
    %c0_10 = arith.constant 0 : index
    %11 = vector.load %arg3[%c0_9, %c0_10] : memref<64x64xf32, #tpu.memory_space<vmem>>, vector<64x64xf32>
    %cst_11 = arith.constant dense<0.000000e+00> : vector<8x64xf32>
    %12 = tpu.matmul %10, %11, %cst_11 {dimension_numbers = #tpu.dot_dimension_numbers<[1], [0], [0], [1], [0, 0, 1, 1], [], []>} : vector<8x64xf32>, vector<64x64xf32>, vector<8x64xf32> -> vector<8x64xf32>
    %13 = vector.broadcast %2 : vector<1x64xf32> to vector<8x64xf32>
    %14 = arith.addf %12, %13 : vector<8x64xf32>
    %cst_12 = arith.constant 0.000000e+00 : f32
    %15 = vector.broadcast %cst_12 : f32 to vector<8x64xf32>
    %16 = arith.maximumf %14, %15 : vector<8x64xf32>
    %c0_13 = arith.constant 0 : index
    %c0_14 = arith.constant 0 : index
    %17 = vector.load %arg4[%c0_13, %c0_14] : memref<64x128xf32, #tpu.memory_space<vmem>>, vector<64x128xf32>
    %cst_15 = arith.constant dense<0.000000e+00> : vector<8x128xf32>
    %18 = tpu.matmul %16, %17, %cst_15 {dimension_numbers = #tpu.dot_dimension_numbers<[1], [0], [0], [1], [0, 0, 1, 1], [], []>} : vector<8x64xf32>, vector<64x128xf32>, vector<8x128xf32> -> vector<8x128xf32>
    %19 = vector.broadcast %3 : vector<1x128xf32> to vector<8x128xf32>
    %20 = arith.addf %18, %19 : vector<8x128xf32>
    %cst_16 = arith.constant 0.000000e+00 : f32
    %21 = vector.broadcast %cst_16 : f32 to vector<8x128xf32>
    %22 = arith.maximumf %20, %21 : vector<8x128xf32>
    %c0_17 = arith.constant 0 : index
    %c0_18 = arith.constant 0 : index
    %23 = vector.load %arg5[%c0_17, %c0_18] : memref<128x256xf32, #tpu.memory_space<vmem>>, vector<128x256xf32>
    %cst_19 = arith.constant dense<0.000000e+00> : vector<8x256xf32>
    %24 = tpu.matmul %22, %23, %cst_19 {dimension_numbers = #tpu.dot_dimension_numbers<[1], [0], [0], [1], [0, 0, 1, 1], [], []>} : vector<8x128xf32>, vector<128x256xf32>, vector<8x256xf32> -> vector<8x256xf32>
    %25 = vector.broadcast %4 : vector<1x256xf32> to vector<8x256xf32>
    %26 = arith.addf %24, %25 : vector<8x256xf32>
    %c0_20 = arith.constant 0 : index
    %c0_21 = arith.constant 0 : index
    %27 = vector.load %arg7[%c0_20, %c0_21] : memref<8x256xf32, #tpu.memory_space<vmem>>, vector<8x256xf32>
    tpu.vector_store %arg7[%c0_20, %c0_21], %26 {strides = array<i32>} : memref<8x256xf32, #tpu.memory_space<vmem>>, vector<8x256xf32>,
    return
  }
  func.func @transform_0(%arg0: i32) -> (i32, i32) {
    %c0_i32 = arith.constant 0 : i32
    %c0_i32_0 = arith.constant 0 : i32
    return %arg0, %c0_i32 : i32, i32
  }
  func.func @transform_1(%arg0: i32) -> (i32, i32) {
    %c0_i32 = arith.constant 0 : i32
    %c0_i32_0 = arith.constant 0 : i32
    %c0_i32_1 = arith.constant 0 : i32
    return %c0_i32, %c0_i32_0 : i32, i32
  }
  func.func @transform_2(%arg0: i32) -> (i32, i32) {
    %c0_i32 = arith.constant 0 : i32
    %c0_i32_0 = arith.constant 0 : i32
    %c0_i32_1 = arith.constant 0 : i32
    return %c0_i32, %c0_i32_0 : i32, i32
  }
  func.func @transform_3(%arg0: i32) -> (i32, i32) {
    %c0_i32 = arith.constant 0 : i32
    %c0_i32_0 = arith.constant 0 : i32
    %c0_i32_1 = arith.constant 0 : i32
    return %c0_i32, %c0_i32_0 : i32, i32
  }
  func.func @transform_4(%arg0: i32) -> (i32, i32) {
    %c0_i32 = arith.constant 0 : i32
    %c0_i32_0 = arith.constant 0 : i32
    %c0_i32_1 = arith.constant 0 : i32
    return %c0_i32, %c0_i32_0 : i32, i32
  }
  func.func @transform_5(%arg0: i32) -> (i32, i32) {
    %c0_i32 = arith.constant 0 : i32
    %c0_i32_0 = arith.constant 0 : i32
    %c0_i32_1 = arith.constant 0 : i32
    return %c0_i32, %c0_i32_0 : i32, i32
  }
  func.func @transform_6(%arg0: i32) -> (i32, i32) {
    %c0_i32 = arith.constant 0 : i32
    %c0_i32_0 = arith.constant 0 : i32
    return %arg0, %c0_i32 : i32, i32
  }
}

</mosaic_0001>

<bundles_post_ra>
// kernel: adaptive_net_forward_slab.1
= control target key start
LH: loop header
LB: loop body
LE: loop exit
PB: predicated region body
PF: predicated region fallthrough
CT: control target
= control target key end

     0   :  { %11 = vsyncpa [#allocation3], 0  ;;  %s819_s0 = inlined_call_operand.hbm [shape: f32[8,32], index: 0, kind: input, shape index: {}]   ;;  %s820_s1 = inlined_call_operand.hbm [shape: f32[32,64], index: 1, kind: input, shape index: {}]   ;;  %s821_s2 = inlined_call_operand.hbm [shape: f32[64,64], index: 2, kind: input, shape index: {}]   ;;  %s822_s3 = inlined_call_operand.hbm [shape: f32[64,128], index: 3, kind: input, shape index: {}]   ;;  %s823_s4 = inlined_call_operand.hbm [shape: f32[128,256], index: 4, kind: input, shape index: {}]   ;;  %s824_s5 = inlined_call_operand.vmem [shape: f32[4,256], index: 5, kind: input, shape index: {}]   ;;  %s825_s6 = inlined_call_operand.hbm [shape: f32[8,256], index: 6, kind: output, shape index: {}]  }
   0x1   :  { %12 = vsyncpa [#allocation6], 0 }
   0x2   :  { %13 = vsyncpa [#allocation9], 0 }
   0x3   :  { %14 = vsyncpa [#allocation4], 0  ;;  %s704_s21 = smov [#allocation5]  }
   0x4   :  { %s30_s22 = sshll.u32 %s704_s21, 4  ;;  %s31_s22 = int_to_ptr.vmem [resolvable:$true] %s30_s22 }
   0x5   :  { %s584_s23 = scalar_lea.vmem %s31_s22, 512  ;;  %p589_p1 = scmp.lt.s32.totalorder %s31_s22, %s31_s22 }
   0x6   :  { %p585_p0 = scmp.ne.s32.totalorder %s31_s22, %s584_s23  ;;  %p590_p2 = scmp.lt.s32.totalorder %s584_s23, %s584_s23 }
   0x8   :  { %p591_p3 = por %p590_p2, %p589_p1 }
   0xa   :  { %p592_p4 = pnand %p591_p3, %p585_p0 }
   0xc   :  { %595 = shalt.err (!%p592_p4)
}
   0xd   :  { %s705_s24 = smov 128   ;;  %s706_s25 = smov 8  }
   0xe   :  { %36 = dma.hbm_to_vmem [thread:$0]  %s820_s1, 512, %s31_s22, [#allocation6], %s705_s24, %s705_s24, %s706_s25  }
   0xf   :  { %s707_s28 = smov [#allocation8]   ;;  %s708_s30 = smov [#allocation2]  }
  0x10   :  { %s54_s29 = sshll.u32 %s707_s28, 4  ;;  %s21_s7 = sshll.u32 %s708_s30, 4  ;;  %s55_s29 = int_to_ptr.vmem [resolvable:$true] %s54_s29  ;;  %s22_s7 = int_to_ptr.vmem [resolvable:$true] %s21_s7 }
  0x11   :  { %s604_s8 = scalar_lea.vmem %s55_s29, 1024  ;;  %p609_p6 = scmp.lt.s32.totalorder %s55_s29, %s55_s29 }
  0x12   :  { %p605_p5 = scmp.ne.s32.totalorder %s55_s29, %s604_s8  ;;  %p610_p7 = scmp.lt.s32.totalorder %s604_s8, %s604_s8 }
  0x14   :  { %p611_p8 = por %p610_p7, %p609_p6 }
  0x16   :  { %p612_p9 = pnand %p611_p8, %p605_p5 }
  0x18   :  { %615 = shalt.err (!%p612_p9)
}
  0x19   :  { %60 = dma.hbm_to_vmem [thread:$0]  %s822_s3, 1024, %s55_s29, [#allocation9], %s705_s24, %s705_s24, %s706_s25  }
  0x1a   :  { %s624_s1 = scalar_lea.vmem %s22_s7, 128  ;;  %p629_p11 = scmp.lt.s32.totalorder %s22_s7, %s22_s7 }
  0x1b   :  { %p625_p10 = scmp.ne.s32.totalorder %s22_s7, %s624_s1  ;;  %p630_p12 = scmp.lt.s32.totalorder %s624_s1, %s624_s1 }
  0x1d   :  { %p631_p13 = por %p630_p12, %p629_p11 }
  0x1f   :  { %p632_p0 = pnand %p631_p13, %p625_p10 }
  0x21   :  { %635 = shalt.err (!%p632_p0)
}
  0x22   :  { %24 = dma.hbm_to_vmem [thread:$0]  %s819_s0, 128, %s22_s7, [#allocation3]  }
  0x23   :  { %s709_s13 = smov [#allocation7]   ;;  %s710_s15 = smov [#allocation10]  }
  0x24   :  { %s42_s14 = sshll.u32 %s709_s13, 4  ;;  %s66_s16 = sshll.u32 %s710_s15, 4  ;;  %s43_s14 = int_to_ptr.vmem [resolvable:$true] %s42_s14  ;;  %s67_s16 = int_to_ptr.vmem [resolvable:$true] %s66_s16 }
  0x25   :  { %s644_s17 = scalar_lea.vmem %s43_s14, 1024  ;;  %p649_p2 = scmp.lt.s32.totalorder %s43_s14, %s43_s14 }
  0x26   :  { %p645_p1 = scmp.ne.s32.totalorder %s43_s14, %s644_s17  ;;  %p650_p3 = scmp.lt.s32.totalorder %s644_s17, %s644_s17 }
  0x28   :  { %p651_p4 = por %p650_p3, %p649_p2 }
  0x2a   :  { %p652_p5 = pnand %p651_p4, %p645_p1 }
  0x2c   :  { %655 = shalt.err (!%p652_p5)
}
  0x2d   :  { %48 = dma.hbm_to_vmem [thread:$0]  %s821_s2, 1024, %s43_s14, [#allocation6], %s705_s24, %s705_s24, %s706_s25  }
  0x2e   :  { %s664_s0 = scalar_lea.vmem %s67_s16, 4096  ;;  %p669_p7 = scmp.lt.s32.totalorder %s67_s16, %s67_s16 }
  0x2f   :  { %p665_p6 = scmp.ne.s32.totalorder %s67_s16, %s664_s0  ;;  %p670_p8 = scmp.lt.s32.totalorder %s664_s0, %s664_s0 }
  0x31   :  { %p671_p9 = por %p670_p8, %p669_p7 }
  0x33   :  { %p672_p10 = pnand %p671_p9, %p665_p6 }
  0x35   :  { %675 = shalt.err (!%p672_p10)
}
  0x36   :  { %s711_s19 = smov 256   ;;  %s712_s20 = smov 16  }
  0x37   :  { %72 = dma.hbm_to_vmem [thread:$0]  %s823_s4, 4096, %s67_s16, [#allocation9], %s711_s19, %s711_s19, %s712_s20  }
  0x38   :  { %696 = dma.done.wait [#allocation3], 128  }
  0x39   :  { %697 = vsyncadd [#allocation3], 4294967168 }
  0x3a   :  { %698 = dma.done.wait [#allocation6], 1536  }
  0x3b   :  { %699 = vsyncadd [#allocation6], 4294965760 }
  0x3c   :  { %700 = dma.done.wait [#allocation9], 5120  }
  0x3d   :  { %701 = vsyncadd [#allocation9], 4294962176  ;;  %v713_v0 = vmov 0.0   ;;  %vm714_vm0 = vmmov 0   ;;  %v99_v1 = vld [vmem:[#allocation5 + $0x18] sm:$0xff]  ;;  %v98_v2 = vld [vmem:[#allocation5 + $0x10] sm:$0xff] }
  0x3e   :  { %515 = vmatprep.subr.mxu0 %v713_v0  ;;  %523 = vmatprep.mubr.msk.f32.mxu0 %vm714_vm0, %v713_v0  ;;  %v97_v3 = vld [vmem:[#allocation5 + $0x8] sm:$0xff]  ;;  %v96_v4 = vld [vmem:[#allocation5] sm:$0xff]  ;;  %v90_v5 = vld [vmem:[#allocation2] sm:$0xff]  ;;  %vm104_vm1 = vcmask 261120   ;;  %vm191_vm2 = vcmask 523264   ;;  %s715_s29 = smov [#allocation11]  }
  0x3f   :  { %459 = vmatprep.mubr.f32.mxu1 %v713_v0  ;;  %516 = vmatpush3.msra.mxu0 %v99_v1  ;;  %v186_v6 = vld [vmem:[#allocation7 + $0x38] sm:$0xff]  ;;  %v185_v7 = vld [vmem:[#allocation7 + $0x30] sm:$0xff]  ;;  %v184_v8 = vld [vmem:[#allocation7 + $0x28] sm:$0xff]  ;;  %s474_s30 = sshll.u32 %s715_s29, 4  ;;  %s475_s30 = int_to_ptr.vmem [resolvable:$true] %s474_s30 }
  0x40   :  { %517 = vmatprep.subr.mxu0 %v713_v0  ;;  %v183_v9 = vld [vmem:[#allocation7 + $0x20] sm:$0xff]  ;;  %v182_v10 = vld [vmem:[#allocation7 + $0x18] sm:$0xff]  ;;  %v181_v11 = vld [vmem:[#allocation7 + $0x10] sm:$0xff]  ;;  %s676_s7 = scalar_lea.vmem %s475_s30, 256  ;;  %p681_p12 = scmp.lt.s32.totalorder %s475_s30, %s475_s30 }
  0x41   :  { %518 = vmatpush3.msra.mxu0 %v98_v2  ;;  %v180_v12 = vld [vmem:[#allocation7 + $0x8] sm:$0xff]  ;;  %v179_v13 = vld [vmem:[#allocation7] sm:$0xff]  ;;  %v486_v14 = vld [vmem:[%s824_s5] ss:$0 sm:$0xff]  ;;  %p677_p11 = scmp.ne.s32.totalorder %s475_s30, %s676_s7  ;;  %p682_p13 = scmp.lt.s32.totalorder %s676_s7, %s676_s7 }
  0x42   :  { %519 = vmatprep.subr.mxu0 %v713_v0  ;;  %v273_v19 = vld [vmem:[#allocation8 + $0x38] sm:$0xff]  ;;  %v272_v20 = vld [vmem:[#allocation8 + $0x30] sm:$0xff]  ;;  %v271_v21 = vld [vmem:[#allocation8 + $0x28] sm:$0xff] }
  0x43   :  { %520 = vmatpush3.msra.mxu0 %v97_v3  ;;  %v270_v22 = vld [vmem:[#allocation8 + $0x20] sm:$0xff]  ;;  %v269_v23 = vld [vmem:[#allocation8 + $0x18] sm:$0xff]  ;;  %v268_v24 = vld [vmem:[#allocation8 + $0x10] sm:$0xff]  ;;  %p683_p0 = por %p682_p13, %p681_p12 }
  0x44   :  { %521 = vmatprep.subr.mxu0 %v713_v0  ;;  %v267_v25 = vld [vmem:[#allocation8 + $0x8] sm:$0xff]  ;;  %v266_v26 = vld [vmem:[#allocation8] sm:$0xff]  ;;  %v383_v27 = vld [vmem:[#allocation10 + $0xf8] sm:$0xff] }
  0x45   :  { %522 = vmatpush3.msra.mxu0 %v96_v4  ;;  %v382_v28 = vld [vmem:[#allocation10 + $0xf0] sm:$0xff]  ;;  %v381_v29 = vld [vmem:[#allocation10 + $0xe8] sm:$0xff]  ;;  %395 = vmatprep.subr.mxu1 %v383_v27  ;;  %v380_v30 = vld [vmem:[#allocation10 + $0xe0] sm:$0xff]  ;;  %p684_p1 = pnand %p683_p0, %p677_p11 }
  0x46   :  { %524 = vmatmul.mubr.msk.f32.vlgmr.msra.gmra.mxu0 %vm104_vm1, %v90_v5  ;;  %526 = vmatprep.subr.mxu0 %v713_v0  ;;  %v379_v31 = vld [vmem:[#allocation10 + $0xd8] sm:$0xff]  ;;  %v378_v32 = vld [vmem:[#allocation10 + $0xd0] sm:$0xff]  ;;  %v377_v33 = vld [vmem:[#allocation10 + $0xc8] sm:$0xff]  ;;  %v385_v5 = vlaneseq }
  0x47   :  { %527 = vmatpush3.msra.mxu0 %v186_v6  ;;  %542 = vmatprep.mubr.msk.f32.mxu0 %vm714_vm0, %v713_v0  ;;  %v376_v34 = vld [vmem:[#allocation10 + $0xc0] sm:$0xff]  ;;  %v375_v35 = vld [vmem:[#allocation10 + $0xb8] sm:$0xff]  ;;  %v374_v36 = vld [vmem:[#allocation10 + $0xb0] sm:$0xff] }
  0x48   :  { %528 = vmatprep.subr.mxu0 %v713_v0  ;;  %396 = vmatpush1.msra.mxu1 %v382_v28  ;;  %v373_v37 = vld [vmem:[#allocation10 + $0xa8] sm:$0xff]  ;;  %v372_v38 = vld [vmem:[#allocation10 + $0xa0] sm:$0xff]  ;;  %v371_v39 = vld [vmem:[#allocation10 + $0x98] sm:$0xff]  ;;  %v386_v6 = vshrl.u32 %v385_v5, 7 }
  0x49   :  { %529 = vmatpush3.msra.mxu0 %v185_v7  ;;  %397 = vmatprep.subr.mxu1 %v381_v29  ;;  %v370_v40 = vld [vmem:[#allocation10 + $0x90] sm:$0xff]  ;;  %v369_v41 = vld [vmem:[#allocation10 + $0x88] sm:$0xff]  ;;  %v368_v42 = vld [vmem:[#allocation10 + $0x80] sm:$0xff] }
  0x4a   :  { %530 = vmatprep.subr.mxu0 %v713_v0  ;;  %398 = vmatpush1.msra.mxu1 %v380_v30  ;;  %v367_v43 = vld [vmem:[#allocation10 + $0x78] sm:$0xff]  ;;  %v366_v44 = vld [vmem:[#allocation10 + $0x70] sm:$0xff]  ;;  %v365_v45 = vld [vmem:[#allocation10 + $0x68] sm:$0xff]  ;;  %v387_v7 = vsub.s32 0, %v386_v6 }
  0x4b   :  { %531 = vmatpush3.msra.mxu0 %v184_v8  ;;  %399 = vmatprep.subr.mxu1 %v379_v31  ;;  %v364_v46 = vld [vmem:[#allocation10 + $0x60] sm:$0xff]  ;;  %v363_v47 = vld [vmem:[#allocation10 + $0x58] sm:$0xff]  ;;  %v362_v48 = vld [vmem:[#allocation10 + $0x50] sm:$0xff] }
  0x4c   :  { %532 = vmatprep.subr.mxu0 %v713_v0  ;;  %400 = vmatpush1.msra.mxu1 %v378_v32  ;;  %v361_v49 = vld [vmem:[#allocation10 + $0x48] sm:$0xff]  ;;  %v360_v50 = vld [vmem:[#allocation10 + $0x40] sm:$0xff]  ;;  %v359_v51 = vld [vmem:[#allocation10 + $0x38] sm:$0xff] }
  0x4d   :  { %533 = vmatpush3.msra.mxu0 %v183_v9  ;;  %401 = vmatprep.subr.mxu1 %v377_v33  ;;  %v358_v52 = vld [vmem:[#allocation10 + $0x30] sm:$0xff]  ;;  %v357_v53 = vld [vmem:[#allocation10 + $0x28] sm:$0xff]  ;;  %v488_v54 = vld [vmem:[%s824_s5 + $0x1] ss:$0 sm:$0xff]  ;;  %v391_v9 = vsub.s32 1, %v386_v6 }
  0x4e   :  { %534 = vmatprep.subr.mxu0 %v713_v0  ;;  %402 = vmatpush1.msra.mxu1 %v376_v34  ;;  %v356_v59 = vld [vmem:[#allocation10 + $0x20] sm:$0xff]  ;;  %v355_v60 = vld [vmem:[#allocation10 + $0x18] sm:$0xff]  ;;  %v354_v61 = vld [vmem:[#allocation10 + $0x10] sm:$0xff] }
  0x4f   :  { %535 = vmatpush3.msra.mxu0 %v182_v10  ;;  %403 = vmatprep.subr.mxu1 %v375_v35  ;;  %v353_v62 = vld [vmem:[#allocation10 + $0x8] sm:$0xff]  ;;  %v352_v63 = vld [vmem:[#allocation10] sm:$0xff]  ;;  %v485_v8 = vld [vmem:[%s824_s5 + $0x3] ss:$4 sm:$0x3] }
  0x50   :  { %536 = vmatprep.subr.mxu0 %v713_v0  ;;  %404 = vmatpush1.msra.mxu1 %v374_v36  ;;  %v388_v10 = vrot.slane %v485_v8, %v387_v7 }
  0x51   :  { %537 = vmatpush3.msra.mxu0 %v181_v11  ;;  %405 = vmatprep.subr.mxu1 %v373_v37  ;;  %v392_v11 = vrot.slane %v485_v8, %v391_v9 }
  0x52   :  { %538 = vmatprep.subr.mxu0 %v713_v0  ;;  %406 = vmatpush1.msra.mxu1 %v372_v38 }
  0x53   :  { %539 = vmatpush3.msra.mxu0 %v180_v12  ;;  %407 = vmatprep.subr.mxu1 %v371_v39 }
  0x54   :  { %540 = vmatprep.subr.mxu0 %v713_v0  ;;  %408 = vmatpush1.msra.mxu1 %v370_v40 }
  0x55   :  { %541 = vmatpush3.msra.mxu0 %v179_v13  ;;  %409 = vmatprep.subr.mxu1 %v369_v41 }
  0x56   :  { %545 = vmatprep.subr.mxu0 %v713_v0  ;;  %410 = vmatpush1.msra.mxu1 %v368_v42 }
  0x57   :  { %411 = vmatprep.subr.mxu1 %v367_v43 }
  0x58   :  { %412 = vmatpush1.msra.mxu1 %v366_v44 }
  0x59   :  { %413 = vmatprep.subr.mxu1 %v365_v45 }
  0x5a   :  { %414 = vmatpush1.msra.mxu1 %v364_v46 }
  0x5b   :  { %415 = vmatprep.subr.mxu1 %v363_v47 }
  0x5c   :  { %416 = vmatpush1.msra.mxu1 %v362_v48 }
  0x5d   :  { %417 = vmatprep.subr.mxu1 %v361_v49 }
  0x5e   :  { %418 = vmatpush1.msra.mxu1 %v360_v50 }
  0x5f   :  { %419 = vmatprep.subr.mxu1 %v359_v51 }
  0x60   :  { %420 = vmatpush1.msra.mxu1 %v358_v52 }
  0x61   :  { %421 = vmatprep.subr.mxu1 %v357_v53 }
  0x62   :  { %422 = vmatpush1.msra.mxu1 %v356_v59 }
  0x63   :  { %423 = vmatprep.subr.mxu1 %v355_v60 }
  0x64   :  { %424 = vmatpush1.msra.mxu1 %v354_v61 }
  0x65   :  { %425 = vmatprep.subr.mxu1 %v353_v62 }
  0x66   :  { %426 = vmatpush1.msra.mxu1 %v352_v63 }
 0x106   :  { %v174_v15 = vpop.f32.mrf.mxu0 }
 0x107   :  { %v175_v16 = vadd.f32 %v486_v14, %v174_v15 }
 0x108   :  { %v525_v17 = vpop.f32.mrf.mxu0 }
 0x109   :  { %v178_v18 = vmax.f32 %v175_v16, 0.0 }
 0x10b   :  { %543 = vmatmul.mubr.msk.f32.vlgmr.msra.gmra.mxu0 %vm191_vm2, %v178_v18 }
 0x10c   :  { %546 = vmatpush3.msra.mxu0 %v273_v19  ;;  %561 = vmatprep.mubr.msk.f32.mxu0 %vm714_vm0, %v713_v0 }
 0x10d   :  { %547 = vmatprep.subr.mxu0 %v713_v0 }
 0x10e   :  { %548 = vmatpush3.msra.mxu0 %v272_v20 }
 0x10f   :  { %549 = vmatprep.subr.mxu0 %v713_v0 }
 0x110   :  { %550 = vmatpush3.msra.mxu0 %v271_v21 }
 0x111   :  { %551 = vmatprep.subr.mxu0 %v713_v0 }
 0x112   :  { %552 = vmatpush3.msra.mxu0 %v270_v22 }
 0x113   :  { %553 = vmatprep.subr.mxu0 %v713_v0 }
 0x114   :  { %554 = vmatpush3.msra.mxu0 %v269_v23 }
 0x115   :  { %555 = vmatprep.subr.mxu0 %v713_v0 }
 0x116   :  { %556 = vmatpush3.msra.mxu0 %v268_v24 }
 0x117   :  { %557 = vmatprep.subr.mxu0 %v713_v0 }
 0x118   :  { %558 = vmatpush3.msra.mxu0 %v267_v25 }
 0x119   :  { %559 = vmatprep.subr.mxu0 %v713_v0  ;;  %v490_v0 = vld [vmem:[%s824_s5 + $0x2] ss:$0 sm:$0xff] }
 0x11a   :  { %560 = vmatpush3.msra.mxu0 %v266_v26 }
 0x1cb   :  { %v261_v55 = vpop.f32.mrf.mxu0 }
 0x1cc   :  { %v262_v56 = vadd.f32 %v488_v54, %v261_v55 }
 0x1cd   :  { %v544_v57 = vpop.f32.mrf.mxu0 }
 0x1ce   :  { %v265_v58 = vmax.f32 %v262_v56, 0.0 }
 0x1d0   :  { %562 = vmatmul.mubr.msk.f32.vlgmr.msra.gmra.mxu0 %vm191_vm2, %v265_v58 }
 0x290   :  { %v347_v1 = vpop.f32.mrf.mxu0 }
 0x291   :  { %v348_v2 = vadd.f32 %v490_v0, %v347_v1 }
 0x292   :  { %v563_v3 = vpop.f32.mrf.mxu0 }
 0x293   :  { %v351_v4 = vmax.f32 %v348_v2, 0.0 }
 0x295   :  { %460 = vmatmul.mubr.f32.vlgmr.msra.gmra.mxu1 %v351_v4 }
 0x355   :  { %v461_v12 = vpop.f32.mrf.mxu1 }
 0x356   :  { %v462_v13 = vadd.f32 %v461_v12, %v388_v10 }
 0x357   :  { %v463_v14 = vpop.f32.mrf.mxu1 }
 0x358   :  { %466 = vst [vmem:[#allocation11] sm:$0xff] %v462_v13  ;;  %v464_v15 = vadd.f32 %v463_v14, %v392_v11 }
 0x35a   :  { %467 = vst [vmem:[#allocation11 + $0x8] sm:$0xff] %v464_v15 }
 0x35b   :  { %687 = shalt.err (!%p684_p1)
}
 0x35c   :  { %477 = dma.vmem_to_hbm [thread:$0]  %s475_s30, 256, %s825_s6, [#allocation4]  }
 0x35d   :  { %702 = dma.done.wait [#allocation4], 256  }
 0x35e   :  { %703 = vsyncadd [#allocation4], 4294967040 }
 0x35f   :  { %481 = vsyncpa [#allocation3], 1 }
 0x360   :  { %482 = vsyncpa [#allocation6], 1 }
 0x361   :  { %483 = vsyncpa [#allocation9], 1 }
 0x362   :  { %484 = vsyncpa [#allocation4], 1 }

</bundles_post_ra>
